<compile_context>
chip_gen: v7x
topology: tpu7x:2x2x1
jax: 0.10.0
libtpu: 0.0.40
codegen_flags: <defaults>
</compile_context>

<pallas_src>
import numpy as np
import jax
import jax.numpy as jnp
from jax.experimental import pallas as pl
from jax.experimental.pallas import tpu as pltpu

NUM_LAYERS = 3        # hidden[2:3] in the PyTorch code requires >= 3 decoder layers
BATCH = 1             # the repeat/cat pattern in the module only type-checks for batch == 1
SRC_LEN = 8
ENC_HID = 32
DEC_HID = 32


# ----------------------------------------------------------------------------- kernel
def attention_kernel(h_col_ref, enc_t_ref, w_h_ref, w_e_ref, b_col_ref, v_row_ref,
                     out_ref):
    # h_col:  (D, 1)   last-layer decoder hidden state (transposed)
    # enc_t:  (E, S)   encoder outputs, transposed so src_len is the lane axis
    # w_h:    (D, D)   attn.weight[:, :D]   (multiplies hidden)
    # w_e:    (D, E)   attn.weight[:, D:]   (multiplies encoder outputs)
    # b_col:  (D, 1)   attn.bias
    # v_row:  (1, D)   v.weight
    # out:    (1, S)   softmax attention weights

    # Hidden projection computed once and broadcast over src_len
    # (instead of materializing hidden.repeat(1, src_len, 1) and a concat).
    h_proj = (jnp.dot(w_h_ref[...], h_col_ref[...],
                      preferred_element_type=jnp.float32)
              + b_col_ref[...])                                          # (D, 1)
    e_proj = jnp.dot(w_e_ref[...], enc_t_ref[...],
                     preferred_element_type=jnp.float32)                 # (D, S)
    energy = jnp.tanh(e_proj + h_proj)                                   # (D, S)

    scores = jnp.dot(v_row_ref[...], energy,
                     preferred_element_type=jnp.float32)                 # (1, S)

    # softmax over src_len (lane axis)
    m = jnp.max(scores, axis=1, keepdims=True)
    ex = jnp.exp(scores - m)
    out_ref[...] = ex / jnp.sum(ex, axis=1, keepdims=True)


# ----------------------------------------------------------------------------- wrapper
def attention_forward(hidden, encoder_outputs, attn_w, attn_b, v_w):
    """hidden: (num_layers, 1, dec_hid); encoder_outputs: (1, src_len, enc_hid);
    attn_w: (dec_hid, dec_hid + enc_hid); attn_b: (dec_hid,); v_w: (1, dec_hid).
    Returns (1, src_len) softmax attention weights (same as the PyTorch module)."""
    dec_hid = attn_w.shape[0]
    src_len = encoder_outputs.shape[1]

    h_col = hidden[2].T                      # hidden[2:3, :, :] with batch=1 -> (dec_hid, 1)
    enc_t = encoder_outputs[0].T             # (enc_hid, src_len)
    w_h = attn_w[:, :dec_hid]                # columns that multiply `hidden`
    w_e = attn_w[:, dec_hid:]                # columns that multiply encoder_outputs
    b_col = attn_b[:, None]                  # (dec_hid, 1)

    args = (h_col, enc_t, w_h, w_e, b_col, v_w)
    return pl.pallas_call(
        attention_kernel,
        out_shape=jax.ShapeDtypeStruct((1, src_len), jnp.float32),
        in_specs=[pl.BlockSpec(memory_space=pltpu.MemorySpace.VMEM)] * len(args),
        out_specs=pl.BlockSpec(memory_space=pltpu.MemorySpace.VMEM),
    )(*args)


# ----------------------------------------------------------------------------- pure-JAX reference (mirrors PyTorch literally)
def attention_ref(hidden, encoder_outputs, attn_w, attn_b, v_w):
    src_len = encoder_outputs.shape[1]
    h = hidden[2:3, :, :]                               # (1, 1, dec_hid)
    h = jnp.tile(h, (1, src_len, 1))                    # .repeat(1, src_len, 1)
    cat = jnp.concatenate([h, encoder_outputs], axis=2)
    energy = jnp.tanh(cat @ attn_w.T + attn_b)          # nn.Linear
    attention = (energy @ v_w.T)[..., 0]                # v(...).squeeze(2) -> (1, src_len)
    return jax.nn.softmax(attention, axis=1)


# ----------------------------------------------------------------------------- main
if __name__ == "__main__":
    key = jax.random.PRNGKey(0)
    k_h, k_e, k_w, k_b, k_v = jax.random.split(key, 5)

    hidden = jax.random.normal(k_h, (NUM_LAYERS, BATCH, DEC_HID), jnp.float32)
    encoder_outputs = jax.random.normal(k_e, (BATCH, SRC_LEN, ENC_HID), jnp.float32)

    # PyTorch nn.Linear default init: uniform(-1/sqrt(fan_in), 1/sqrt(fan_in))
    s_attn = 1.0 / np.sqrt(ENC_HID + DEC_HID)
    s_v = 1.0 / np.sqrt(DEC_HID)
    attn_w = jax.random.uniform(k_w, (DEC_HID, DEC_HID + ENC_HID), jnp.float32, -s_attn, s_attn)
    attn_b = jax.random.uniform(k_b, (DEC_HID,), jnp.float32, -s_attn, s_attn)
    v_w = jax.random.uniform(k_v, (1, DEC_HID), jnp.float32, -s_v, s_v)

    out = attention_forward(hidden, encoder_outputs, attn_w, attn_b, v_w)
    out = jax.block_until_ready(out)

    ref = jax.block_until_ready(attention_ref(hidden, encoder_outputs, attn_w, attn_b, v_w))
    np.testing.assert_allclose(np.asarray(out), np.asarray(ref), rtol=1e-4, atol=1e-6)

    assert out.shape == (BATCH, SRC_LEN)
    assert abs(float(np.asarray(out).sum()) - 1.0) < 1e-4   # rows sum to 1 (softmax)
    print("KERNEL_OK")
</pallas_src>

<mosaic_0001>
module attributes {stable_mosaic.version = 11 : i64} {
  func.func @attention_kernel(%arg0: memref<32x1xf32, #tpu.memory_space<vmem>>, %arg1: memref<32x8xf32, #tpu.memory_space<vmem>>, %arg2: memref<32x32xf32, #tpu.memory_space<vmem>>, %arg3: memref<32x32xf32, #tpu.memory_space<vmem>>, %arg4: memref<32x1xf32, #tpu.memory_space<vmem>>, %arg5: memref<1x32xf32, #tpu.memory_space<vmem>>, %arg6: memref<1x8xf32, #tpu.memory_space<vmem>>) attributes {dimension_semantics = [], scalar_prefetch = 0 : i64, scratch_operands = 0 : i64, tpu.core_type = #tpu.core_type<tc>} {
    %c0 = arith.constant 0 : index
    %c0_0 = arith.constant 0 : index
    %0 = vector.load %arg2[%c0, %c0_0] : memref<32x32xf32, #tpu.memory_space<vmem>>, vector<32x32xf32>
    %c0_1 = arith.constant 0 : index
    %c0_2 = arith.constant 0 : index
    %1 = vector.load %arg0[%c0_1, %c0_2] : memref<32x1xf32, #tpu.memory_space<vmem>>, vector<32x1xf32>
    %cst = arith.constant dense<0.000000e+00> : vector<32x1xf32>
    %2 = tpu.matmul %0, %1, %cst {dimension_numbers = #tpu.dot_dimension_numbers<[1], [0], [0], [1], [0, 0, 1, 1], [], []>} : vector<32x32xf32>, vector<32x1xf32>, vector<32x1xf32> -> vector<32x1xf32>
    %c0_3 = arith.constant 0 : index
    %c0_4 = arith.constant 0 : index
    %3 = vector.load %arg4[%c0_3, %c0_4] : memref<32x1xf32, #tpu.memory_space<vmem>>, vector<32x1xf32>
    %4 = arith.addf %2, %3 : vector<32x1xf32>
    %c0_5 = arith.constant 0 : index
    %c0_6 = arith.constant 0 : index
    %5 = vector.load %arg3[%c0_5, %c0_6] : memref<32x32xf32, #tpu.memory_space<vmem>>, vector<32x32xf32>
    %c0_7 = arith.constant 0 : index
    %c0_8 = arith.constant 0 : index
    %6 = vector.load %arg1[%c0_7, %c0_8] : memref<32x8xf32, #tpu.memory_space<vmem>>, vector<32x8xf32>
    %cst_9 = arith.constant dense<0.000000e+00> : vector<32x8xf32>
    %7 = tpu.matmul %5, %6, %cst_9 {dimension_numbers = #tpu.dot_dimension_numbers<[1], [0], [0], [1], [0, 0, 1, 1], [], []>} : vector<32x32xf32>, vector<32x8xf32>, vector<32x8xf32> -> vector<32x8xf32>
    %8 = vector.broadcast %4 : vector<32x1xf32> to vector<32x8xf32>
    %9 = arith.addf %7, %8 : vector<32x8xf32>
    %10 = math.tanh %9 : vector<32x8xf32>
    %c0_10 = arith.constant 0 : index
    %c0_11 = arith.constant 0 : index
    %11 = vector.load %arg5[%c0_10, %c0_11] : memref<1x32xf32, #tpu.memory_space<vmem>>, vector<1x32xf32>
    %cst_12 = arith.constant dense<0.000000e+00> : vector<1x8xf32>
    %12 = tpu.matmul %11, %10, %cst_12 {dimension_numbers = #tpu.dot_dimension_numbers<[1], [0], [0], [1], [0, 0, 1, 1], [], []>} : vector<1x32xf32>, vector<32x8xf32>, vector<1x8xf32> -> vector<1x8xf32>
    %cst_13 = arith.constant dense<0xFF800000> : vector<1xf32>
    %13 = vector.multi_reduction <maximumf>, %12, %cst_13 [1] : vector<1x8xf32> to vector<1xf32>
    %14 = vector.shape_cast %13 : vector<1xf32> to vector<1x1xf32>
    %15 = vector.broadcast %14 : vector<1x1xf32> to vector<1x8xf32>
    %16 = arith.subf %12, %15 : vector<1x8xf32>
    %17 = math.exp %16 : vector<1x8xf32>
    %cst_14 = arith.constant dense<0.000000e+00> : vector<1xf32>
    %18 = vector.multi_reduction <add>, %17, %cst_14 [1] : vector<1x8xf32> to vector<1xf32>
    %19 = vector.shape_cast %18 : vector<1xf32> to vector<1x1xf32>
    %20 = vector.broadcast %19 : vector<1x1xf32> to vector<1x8xf32>
    %21 = arith.divf %17, %20 : vector<1x8xf32>
    %c0_15 = arith.constant 0 : index
    %c0_16 = arith.constant 0 : index
    %22 = vector.load %arg6[%c0_15, %c0_16] : memref<1x8xf32, #tpu.memory_space<vmem>>, vector<1x8xf32>
    tpu.vector_store %arg6[%c0_15, %c0_16], %21 {strides = array<i32>} : memref<1x8xf32, #tpu.memory_space<vmem>>, vector<1x8xf32>,
    return
  }
}

</mosaic_0001>

<bundles_post_ra>
// kernel: tpu_custom_call.1
= control target key start
LH: loop header
LB: loop body
LE: loop exit
PB: predicated region body
PF: predicated region fallthrough
CT: control target
= control target key end

     0   :  { %vm36_vm0 = vcmask 261120   ;;  %s625_s0 = inlined_call_operand.vmem [shape: f32[32,1], index: 0, kind: input, shape index: {}]   ;;  %s626_s1 = inlined_call_operand.vmem [shape: f32[32,8], index: 1, kind: input, shape index: {}]   ;;  %s627_s2 = inlined_call_operand.vmem [shape: f32[32,32], index: 2, kind: input, shape index: {}]   ;;  %s628_s3 = inlined_call_operand.vmem [shape: f32[32,32], index: 3, kind: input, shape index: {}]   ;;  %s629_s4 = inlined_call_operand.vmem [shape: f32[32,1], index: 4, kind: input, shape index: {}]   ;;  %s630_s5 = inlined_call_operand.vmem [shape: f32[1,32], index: 5, kind: input, shape index: {}]   ;;  %s631_s6 = inlined_call_operand.hbm [shape: f32[1,8], index: 6, kind: output, shape index: {}]  }
   0x1   :  { %v28_v0 = vld [vmem:[%s625_s0] sm:$0xff]  ;;  %v29_v1 = vld [vmem:[%s625_s0 + $0x8] sm:$0xff]  ;;  %v30_v2 = vld [vmem:[%s625_s0 + $0x10] sm:$0xff] }
   0x2   :  { %v433_v3 = vpack.c.bf16 %v29_v1, %v28_v0  ;;  %v31_v4 = vld [vmem:[%s625_s0 + $0x18] sm:$0xff]  ;;  %v24_v5 = vld [vmem:[%s627_s2] sm:$0xff]  ;;  %v139_v8 = vld [vmem:[%s626_s1 + $0x8] sm:$0xff] }
   0x3   :  { %v437_v6 = vpack.c.bf16 %v31_v4, %v30_v2  ;;  %402 = vmatprep.mubr.msk.f32.mxu0 %vm36_vm0, %v24_v5  ;;  %v138_v7 = vld [vmem:[%s626_s1] sm:$0xff]  ;;  %v140_v9 = vld [vmem:[%s626_s1 + $0x10] sm:$0xff]  ;;  %v141_v10 = vld [vmem:[%s626_s1 + $0x18] sm:$0xff] }
   0x4   :  { %434 = vmatprep.subr.bf16.mxu0 %v433_v3  ;;  %v441_v11 = vpack.c.bf16 %v139_v8, %v138_v7  ;;  %v445_v12 = vpack.c.bf16 %v141_v10, %v140_v9  ;;  %v134_v13 = vld [vmem:[%s628_s3] sm:$0xff] }
   0x5   :  { %436 = vmatpush3.bf16.msra.mxu0 %v433_v3  ;;  %416 = vmatprep.mubr.msk.f32.mxu1 %vm36_vm0, %v134_v13 }
   0x6   :  { %438 = vmatprep.subr.bf16.mxu0 %v437_v6 }
   0x7   :  { %11 = vsyncpa [#allocation3], 0  ;;  %442 = vmatprep.subr.bf16.mxu1 %v441_v11  ;;  %v25_v14 = vld [vmem:[%s627_s2 + $0x8] sm:$0xff]  ;;  %v26_v15 = vld [vmem:[%s627_s2 + $0x10] sm:$0xff]  ;;  %v498_v20 = vmov 0   ;;  %v499_v37 = vmov 0.0|0.0  }
   0x8   :  { %444 = vmatpush3.bf16.msra.mxu1 %v441_v11  ;;  %v135_v16 = vld [vmem:[%s628_s3 + $0x8] sm:$0xff]  ;;  %v27_v17 = vld [vmem:[%s627_s2 + $0x18] sm:$0xff]  ;;  %v136_v18 = vld [vmem:[%s628_s3 + $0x10] sm:$0xff]  ;;  %460 = vset.pattern.permute.xlu0 %v498_v20  ;;  %vm500_vm1 = vmmov 0   ;;  %v501_v38 = vmov 0.0   ;;  %vm337_vm2 = vcmask 57344  }
   0x9   :  { %440 = vmatpush3.bf16.msra.mxu0 %v437_v6  ;;  %446 = vmatprep.subr.bf16.mxu1 %v445_v12  ;;  %v137_v19 = vld [vmem:[%s628_s3 + $0x18] sm:$0xff]  ;;  %v32_v21 = vld [vmem:[%s629_s4] sm:$0xff]  ;;  %v33_v25 = vld [vmem:[%s629_s4 + $0x8] sm:$0xff]  ;;  %s502_s10 = smov [#allocation2]  }
   0xa   :  { %461 = vset.pattern.permute.xlu1 %v498_v20  ;;  %v34_v26 = vld [vmem:[%s629_s4 + $0x10] sm:$0xff]  ;;  %v35_v33 = vld [vmem:[%s629_s4 + $0x18] sm:$0xff]  ;;  %449 = vmatprep.subr.bf16.mxu0 %v499_v37  ;;  %v263_v53 = vld [vmem:[%s630_s5] sm:$0x1]  ;;  %s356_s5 = sshll.u32 %s502_s10, 4  ;;  %s357_s5 = int_to_ptr.vmem [resolvable:$true] %s356_s5 }
   0xb   :  { %s474_s11 = scalar_lea.vmem %s357_s5, 16  ;;  %s478_s12 = scalar_lea.vmem %s357_s5, 32 }
   0xc   :  { %403 = vmatmul.mubr.msk.f32.vlgmr.msra.gmra.mrb[0].mxu0 %vm36_vm0, %v25_v14  ;;  %448 = vmatpush3.bf16.msra.mxu1 %v445_v12  ;;  %p475_p0 = scmp.ne.s32.totalorder %s357_s5, %s474_s11  ;;  %p479_p1 = scmp.lt.s32.totalorder %s357_s5, %s357_s5 }
   0xd   :  { %405 = vmatprep.mubr.msk.f32.mxu0 %vm36_vm0, %v26_v15  ;;  %p480_p2 = scmp.lt.s32.totalorder %s478_s12, %s474_s11 }
   0xf   :  { %417 = vmatmul.mubr.msk.f32.vlgmr.msra.gmra.mrb[0].mxu1 %vm36_vm0, %v135_v16  ;;  %p481_p3 = por %p480_p2, %p479_p1 }
  0x10   :  { %406 = vmatmul.mubr.msk.f32.gmra.mrb[2].mxu0 %vm36_vm0, %v27_v17  ;;  %419 = vmatprep.mubr.msk.f32.mxu1 %vm36_vm0, %v136_v18 }
  0x11   :  { %430 = vmatprep.mubr.msk.f32.mxu0 %vm500_vm1, %v501_v38  ;;  %p482_p4 = pnand %p481_p3, %p475_p0 }
  0x13   :  { %420 = vmatmul.mubr.msk.f32.gmra.mrb[2].mxu1 %vm36_vm0, %v137_v19 }
  0xdf   :  { %v404_v22 = vpop.f32.mrb[0].mxu0 }
  0xe0   :  { %v115_v23 = vpop.f32.mrb[1].mxu0  ;;  %v121_v31 = vadd.f32 %v404_v22, %v33_v25 }
  0xe1   :  { %v116_v24 = vadd.f32 %v115_v23, %v32_v21 }
  0xe2   :  { %v418_v27 = vpop.f32.mrb[0].mxu1 }
  0xe3   :  { %v407_v28 = vpop.f32.mrb[2].mxu0  ;;  %144 = vperm.xlu0 %460, %v116_v24   ;;  %v240_v29 = vpop.f32.mrb[1].mxu1 }
  0xe4   :  { %v125_v30 = vpop.f32.mrb[3].mxu0  ;;  %v131_v36 = vadd.f32 %v407_v28, %v35_v33 }
  0xe5   :  { %v126_v32 = vadd.f32 %v125_v30, %v34_v26 }
  0xe6   :  { %v421_v34 = vpop.f32.mrb[2].mxu1 }
  0xe7   :  { %154 = vperm.xlu1 %461, %v126_v32   ;;  %149 = vperm.xlu0 %460, %v121_v31   ;;  %v250_v35 = vpop.f32.mrb[3].mxu1 }
  0xeb   :  { %159 = vperm.xlu1 %461, %v131_v36  }
 0x162   :  { %v145_v39 = vpop.permute.xlu0 %144 }
 0x163   :  { %v241_v40 = vadd.f32 %v240_v29, %v145_v39 }
 0x165   :  { %462 = vtanh.f32 %v241_v40 }
 0x166   :  { %v155_v41 = vpop.permute.xlu1 %154  ;;  %v150_v42 = vpop.permute.xlu0 %149 }
 0x167   :  { %v246_v43 = vadd.f32 %v418_v27, %v150_v42  ;;  %v251_v44 = vadd.f32 %v250_v35, %v155_v41 }
 0x169   :  { %464 = vtanh.f32 %v246_v43 }
 0x16a   :  { %v160_v45 = vpop.permute.xlu1 %159  ;;  %466 = vtanh.f32 %v251_v44 }
 0x16b   :  { %v256_v46 = vadd.f32 %v421_v34, %v160_v45 }
 0x16d   :  { %468 = vtanh.f32 %v256_v46 }
 0x16f   :  { %v463_v47 = vpop.eup %462 }
 0x173   :  { %v465_v48 = vpop.eup %464 }
 0x174   :  { %v450_v49 = vpack.c.bf16 %v465_v48, %v463_v47  ;;  %v467_v50 = vpop.eup %466 }
 0x176   :  { %451 = vmatpush3.bf16.msra.mxu0 %v450_v49 }
 0x177   :  { %v469_v51 = vpop.eup %468  ;;  %452 = vmatprep.subr.bf16.mxu0 %v499_v37 }
 0x178   :  { %v453_v52 = vpack.c.bf16 %v469_v51, %v467_v50 }
 0x17a   :  { %454 = vmatpush3.bf16.msra.mxu0 %v453_v52 }
 0x17d   :  { %431 = vmatmul.mubr.msk.f32.vlgmr.msra.gmra.mrb[4].mxu0 %vm36_vm0, %v263_v53 }
 0x250   :  { %v333_v54 = vpop.f32.mrb[4].mxu0 }
 0x251   :  { %v432_v55 = vpop.f32.mrb[5].mxu0  ;;  %v338_v56 = vsel %vm337_vm2, %v333_v54, -inf }
 0x252   :  { %339 = vmax.xlane.f32.xlu0 %v338_v56 }
 0x2df   :  { %v340_v57 = vpop.xlane.xlu0 %339 }
 0x2e0   :  { %v341_v58 = vsub.f32 %v333_v54, %v340_v57 }
 0x2e2   :  { %v342_v59 = vmul.f32 1.442695, %v341_v58 }
 0x2e4   :  { %470 = vpow2.f32 %v342_v59 }
 0x2ee   :  { %v471_v60 = vpop.eup %470 }
 0x2ef   :  { %v344_v61 = vsel %vm337_vm2, %v471_v60, 0.0 }
 0x2f0   :  { %345 = vadd.xlane.f32.xlu1 %v344_v61 }
 0x37d   :  { %v346_v62 = vpop.xlane.xlu1 %345 }
 0x37e   :  { %472 = vrcp.f32 %v346_v62 }
 0x388   :  { %v473_v63 = vpop.eup %472 }
 0x389   :  { %v348_v0 = vmul.f32 %v473_v63, %v471_v60 }
 0x38b   :  { %349 = vst.msk [vmem:[#allocation2] sm:$0x1] %vm337_vm2, %v348_v0 }
 0x38c   :  { %485 = shalt.err (!%p482_p4)
}
 0x38d   :  { %s486_s14 = scalar_lea.hbm %s631_s6, 16 }
 0x38e   :  { %p487_p5 = scmp.ne.s32.totalorder %s631_s6, %s486_s14  ;;  %p490_p6 = scmp.lt.u32.totalorder %s486_s14, %s631_s6 }
 0x390   :  { %p492_p7 = pnand %p490_p6, %p487_p5 }
 0x392   :  { %495 = shalt.err (!%p492_p7)
}
 0x393   :  { %359 = dma.vmem_to_hbm [thread:$0]  %s357_s5, 16, %s631_s6, [#allocation3]  }
 0x394   :  { %496 = dma.done.wait [#allocation3], 16  }
 0x395   :  { %497 = vsyncadd [#allocation3], 4294967280 }
 0x396   :  { %363 = vsyncpa [#allocation3], 1 }

</bundles_post_ra>
